<compile_context>
chip_gen: v7x
topology: tpu7x:2x2x1
jax: 0.10.0
libtpu: 0.0.40
codegen_flags: <defaults>
</compile_context>

<pallas_src>
import math
from functools import partial

import jax
import jax.numpy as jnp
from jax.experimental import pallas as pl
from jax.experimental.pallas import tpu as pltpu

BN_EPS = 1e-5


# ----------------------------------------------------------------------------
# Fused Pallas matmul kernel:  out = [relu](x @ w + b [+ residual])
# ----------------------------------------------------------------------------
def _mm_kernel(*refs, relu, has_res):
    if has_res:
        x_ref, w_ref, b_ref, r_ref, o_ref = refs
    else:
        x_ref, w_ref, b_ref, o_ref = refs
        r_ref = None
    k = pl.program_id(2)

    @pl.when(k == 0)
    def _():
        o_ref[...] = jnp.zeros_like(o_ref)

    # bf16 operands on the MXU, f32 accumulation directly into the resident
    # output block (output BlockSpec index is constant along the K grid axis).
    o_ref[...] += jnp.dot(x_ref[...], w_ref[...],
                          preferred_element_type=jnp.float32)

    @pl.when(k == pl.num_programs(2) - 1)
    def _():
        out = o_ref[...] + b_ref[...]
        if has_res:                       # fused residual add
            out = out + r_ref[...]
        if relu:                          # fused ReLU
            out = jnp.maximum(out, 0.0)
        o_ref[...] = out


def _ceil_to(x, m):
    return -(-x // m) * m


def _pick_tile(dim, prefs):
    for t in prefs:
        if dim % t == 0:
            return t
    return dim


def pallas_matmul(x, w, b, residual=None, relu=False):
    """y = [relu](x @ w + b [+ residual]);  x:[M,K], w:[K,N], b:[N], all f32."""
    M, K = x.shape
    N = w.shape[1]
    Mp = _ceil_to(M, 16)          # bf16 sublane granularity
    Kp = _ceil_to(K, 128)         # lane granularity
    Np = _ceil_to(N, 128)

    # Skip HBM padding copies when shapes are already tile multiples.
    if (Mp, Kp) != (M, K):
        x = jnp.pad(x, ((0, Mp - M), (0, Kp - K)))
    if (Kp, Np) != (K, N):
        w = jnp.pad(w, ((0, Kp - K), (0, Np - N)))
    if Np != N:
        b = jnp.pad(b, ((0, Np - N),))
    b = b.reshape(1, Np).astype(jnp.float32)

    has_res = residual is not None
    if has_res:
        residual = residual.astype(jnp.float32)
        if residual.shape != (Mp, Np):
            residual = jnp.pad(residual, ((0, Mp - M), (0, Np - N)))

    # bf16 GEMM inputs; accumulation and epilogue stay in f32.
    xb = x.astype(jnp.bfloat16)
    wb = w.astype(jnp.bfloat16)

    TM = _pick_tile(Mp, (512, 256, 128, 64, 32, 16))
    TN = _pick_tile(Np, (512, 256, 128))
    TK = _pick_tile(Kp, (512, 256, 128))

    in_specs = [
        pl.BlockSpec((TM, TK), lambda i, j, k: (i, k)),
        pl.BlockSpec((TK, TN), lambda i, j, k: (k, j)),
        pl.BlockSpec((1, TN), lambda i, j, k: (0, j)),
    ]
    inputs = [xb, wb, b]
    if has_res:
        in_specs.append(pl.BlockSpec((TM, TN), lambda i, j, k: (i, j)))
        inputs.append(residual)

    out = pl.pallas_call(
        partial(_mm_kernel, relu=relu, has_res=has_res),
        out_shape=jax.ShapeDtypeStruct((Mp, Np), jnp.float32),
        grid_spec=pltpu.PrefetchScalarGridSpec(
            num_scalar_prefetch=0,
            grid=(Mp // TM, Np // TN, Kp // TK),
            in_specs=in_specs,
            out_specs=pl.BlockSpec((TM, TN), lambda i, j, k: (i, j)),
        ),
        compiler_params=pltpu.CompilerParams(
            dimension_semantics=("parallel", "parallel", "arbitrary")),
    )(*inputs)

    if (Mp, Np) != (M, N):
        out = out[:M, :N]
    return out


# ----------------------------------------------------------------------------
# Conv via im2col + fused Pallas GEMM
# ----------------------------------------------------------------------------
def conv2d_pallas(x, w, b, stride=1, pad=0, relu=False, residual=None):
    """x: [B,H,W,Cin] NHWC, w: [KH,KW,Cin,Cout], b: [Cout]."""
    KH, KW, Cin, Cout = w.shape
    B = x.shape[0]
    if KH == 1 and KW == 1 and pad == 0:
        xs = x[:, ::stride, ::stride, :]
        Ho, Wo = xs.shape[1], xs.shape[2]
        patches = xs.reshape(B * Ho * Wo, Cin)
        wmat = w.reshape(Cin, Cout)
    else:
        xp = jnp.pad(x, ((0, 0), (pad, pad), (pad, pad), (0, 0)))
        Hp, Wp = xp.shape[1], xp.shape[2]
        Ho = (Hp - KH) // stride + 1
        Wo = (Wp - KW) // stride + 1
        cols = [xp[:, di:di + stride * (Ho - 1) + 1:stride,
                   dj:dj + stride * (Wo - 1) + 1:stride, :]
                for di in range(KH) for dj in range(KW)]
        patches = jnp.concatenate(cols, axis=-1).reshape(B * Ho * Wo, KH * KW * Cin)
        wmat = w.reshape(KH * KW * Cin, Cout)
    res2d = None if residual is None else residual.reshape(B * Ho * Wo, Cout)
    y = pallas_matmul(patches, wmat, b, residual=res2d, relu=relu)
    return y.reshape(B, Ho, Wo, Cout)


def fold_bn(conv, bn):
    """Fold eval-mode BatchNorm into the preceding (bias-free) conv."""
    scale = bn["gamma"] * jax.lax.rsqrt(bn["var"] + BN_EPS)
    w = conv["w"] * scale                     # broadcast over Cout (last axis)
    b = bn["beta"] - bn["mean"] * scale
    return w, b


# ----------------------------------------------------------------------------
# BasicBlock forward (mirrors the PyTorch module)
# ----------------------------------------------------------------------------
def basic_block_forward(params, x_nchw):
    x = jnp.transpose(x_nchw, (0, 2, 3, 1)).astype(jnp.float32)   # NCHW -> NHWC

    if "down" in params:                       # downsample = conv1x1 + BN
        wd, bd = fold_bn(params["down"], params["down_bn"])
        identity = conv2d_pallas(x, wd, bd, stride=params["stride"], pad=0,
                                 relu=False)
    else:
        identity = x

    w1, b1 = fold_bn(params["conv1"], params["bn1"])
    out = conv2d_pallas(x, w1, b1, stride=params["stride"], pad=1, relu=True)

    # conv2 + BN2 + residual add + final ReLU all fused into one GEMM epilogue.
    w2, b2 = fold_bn(params["conv2"], params["bn2"])
    out = conv2d_pallas(out, w2, b2, stride=1, pad=1, relu=True,
                        residual=identity)
    return jnp.transpose(out, (0, 3, 1, 2))    # back to NCHW


# ----------------------------------------------------------------------------
# Plain-JAX reference (f32, unfused) for correctness checking
# ----------------------------------------------------------------------------
def reference_forward(params, x_nchw):
    x = jnp.transpose(x_nchw, (0, 2, 3, 1)).astype(jnp.float32)

    def conv(x, w, stride, pad):
        return jax.lax.conv_general_dilated(
            x, w, window_strides=(stride, stride),
            padding=((pad, pad), (pad, pad)),
            dimension_numbers=("NHWC", "HWIO", "NHWC"))

    def bn(x, p):
        return (x - p["mean"]) * jax.lax.rsqrt(p["var"] + BN_EPS) * p["gamma"] \
            + p["beta"]

    if "down" in params:
        identity = bn(conv(x, params["down"]["w"], params["stride"], 0),
                      params["down_bn"])
    else:
        identity = x
    out = jax.nn.relu(bn(conv(x, params["conv1"]["w"], params["stride"], 1),
                         params["bn1"]))
    out = bn(conv(out, params["conv2"]["w"], 1, 1), params["bn2"])
    out = jax.nn.relu(out + identity)
    return jnp.transpose(out, (0, 3, 1, 2))


# ----------------------------------------------------------------------------
# Deterministic parameter init (no pretrained weights available here)
# ----------------------------------------------------------------------------
def _conv_w(key, kh, kw, cin, cout):
    fan_in = kh * kw * cin
    return jax.random.normal(key, (kh, kw, cin, cout), jnp.float32) / math.sqrt(fan_in)


def _bn_p(key, c):
    k1, k2, k3, k4 = jax.random.split(key, 4)
    return dict(gamma=1.0 + 0.1 * jax.random.normal(k1, (c,), jnp.float32),
                beta=0.1 * jax.random.normal(k2, (c,), jnp.float32),
                mean=0.1 * jax.random.normal(k3, (c,), jnp.float32),
                var=0.5 + jax.random.uniform(k4, (c,), jnp.float32))


def init_basic_block(key, inplanes, planes, stride):
    ks = jax.random.split(key, 6)
    p = dict(conv1=dict(w=_conv_w(ks[0], 3, 3, inplanes, planes)),
             bn1=_bn_p(ks[1], planes),
             conv2=dict(w=_conv_w(ks[2], 3, 3, planes, planes)),
             bn2=_bn_p(ks[3], planes),
             stride=stride)
    if stride != 1 or inplanes != planes:      # downsample path (conv1x1 + BN)
        p["down"] = dict(w=_conv_w(ks[4], 1, 1, inplanes, planes))
        p["down_bn"] = _bn_p(ks[5], planes)
    return p


# ----------------------------------------------------------------------------
if __name__ == "__main__":
    root = jax.random.PRNGKey(0)
    kx1, kx2, kp1, kp2 = jax.random.split(root, 4)

    # Block 1: stride-2 block with downsample (inplanes=4 -> planes=8).
    x1 = jax.random.normal(kx1, (2, 4, 16, 16), jnp.float32)        # NCHW
    params1 = init_basic_block(kp1, inplanes=4, planes=8, stride=2)
    fwd1 = jax.jit(partial(basic_block_forward, params1))
    out1 = jax.block_until_ready(fwd1(x1))
    ref1 = jax.block_until_ready(jax.jit(partial(reference_forward, params1))(x1))
    assert out1.shape == (2, 8, 8, 8), out1.shape
    assert bool(jnp.all(jnp.isfinite(out1)))
    assert bool(jnp.allclose(out1, ref1, rtol=5e-2, atol=5e-2)), \
        float(jnp.max(jnp.abs(out1 - ref1)))

    # Block 2: stride-1 block with identity residual (inplanes=planes=8).
    x2 = jax.random.normal(kx2, (2, 8, 16, 16), jnp.float32)        # NCHW
    params2 = init_basic_block(kp2, inplanes=8, planes=8, stride=1)
    fwd2 = jax.jit(partial(basic_block_forward, params2))
    out2 = jax.block_until_ready(fwd2(x2))
    ref2 = jax.block_until_ready(jax.jit(partial(reference_forward, params2))(x2))
    assert out2.shape == (2, 8, 16, 16), out2.shape
    assert bool(jnp.all(jnp.isfinite(out2)))
    assert bool(jnp.allclose(out2, ref2, rtol=5e-2, atol=5e-2)), \
        float(jnp.max(jnp.abs(out2 - ref2)))

    print("KERNEL_OK")
</pallas_src>

<mosaic_0001>
module attributes {stable_mosaic.version = 11 : i64} {
  func.func @_mm_kernel(%arg0: i32, %arg1: i32, %arg2: i32, %arg3: memref<128x128xbf16, #tpu.memory_space<vmem>>, %arg4: memref<128x128xbf16, #tpu.memory_space<vmem>>, %arg5: memref<1x128xf32, #tpu.memory_space<vmem>>, %arg6: memref<128x128xf32, #tpu.memory_space<vmem>>) attributes {dimension_semantics = [#tpu.dimension_semantics<parallel>, #tpu.dimension_semantics<parallel>, #tpu.dimension_semantics<arbitrary>], iteration_bounds = array<i64: 1, 1, 1>, scalar_prefetch = 0 : i64, scratch_operands = 0 : i64, tpu.core_type = #tpu.core_type<tc>, window_params = [{transform_indices = @transform_0, window_bounds = array<i64: 128, 128>}, {transform_indices = @transform_1, window_bounds = array<i64: 128, 128>}, {transform_indices = @transform_2, window_bounds = array<i64: 1, 128>}, {transform_indices = @transform_3, window_bounds = array<i64: 128, 128>}]} {
    %c0_i32 = arith.constant 0 : i32
    %0 = arith.cmpi eq, %arg2, %c0_i32 : i32
    %1 = arith.extui %0 : i1 to i32
    %c0_i32_0 = arith.constant 0 : i32
    %2 = arith.cmpi ne, %1, %c0_i32_0 : i32
    scf.if %2 {
      %cst_10 = arith.constant 0.000000e+00 : f32
      %12 = vector.broadcast %cst_10 : f32 to vector<128x128xf32>
      %c0_11 = arith.constant 0 : index
      %c0_12 = arith.constant 0 : index
      %13 = vector.load %arg6[%c0_11, %c0_12] : memref<128x128xf32, #tpu.memory_space<vmem>>, vector<128x128xf32>
      tpu.vector_store %arg6[%c0_11, %c0_12], %12 {strides = array<i32>} : memref<128x128xf32, #tpu.memory_space<vmem>>, vector<128x128xf32>,
    } else {
    }
    %c0 = arith.constant 0 : index
    %c0_1 = arith.constant 0 : index
    %3 = vector.load %arg6[%c0, %c0_1] : memref<128x128xf32, #tpu.memory_space<vmem>>, vector<128x128xf32>
    %c0_2 = arith.constant 0 : index
    %c0_3 = arith.constant 0 : index
    %4 = vector.load %arg3[%c0_2, %c0_3] : memref<128x128xbf16, #tpu.memory_space<vmem>>, vector<128x128xbf16>
    %c0_4 = arith.constant 0 : index
    %c0_5 = arith.constant 0 : index
    %5 = vector.load %arg4[%c0_4, %c0_5] : memref<128x128xbf16, #tpu.memory_space<vmem>>, vector<128x128xbf16>
    %cst = arith.constant dense<0.000000e+00> : vector<128x128xf32>
    %6 = tpu.matmul %4, %5, %cst {dimension_numbers = #tpu.dot_dimension_numbers<[1], [0], [0], [1], [0, 0, 1, 1], [], []>} : vector<128x128xbf16>, vector<128x128xbf16>, vector<128x128xf32> -> vector<128x128xf32>
    %7 = arith.addf %3, %6 : vector<128x128xf32>
    %c0_6 = arith.constant 0 : index
    %c0_7 = arith.constant 0 : index
    %8 = vector.load %arg6[%c0_6, %c0_7] : memref<128x128xf32, #tpu.memory_space<vmem>>, vector<128x128xf32>
    tpu.vector_store %arg6[%c0_6, %c0_7], %7 {strides = array<i32>} : memref<128x128xf32, #tpu.memory_space<vmem>>, vector<128x128xf32>,
    %c0_i32_8 = arith.constant 0 : i32
    %9 = arith.cmpi eq, %arg2, %c0_i32_8 : i32
    %10 = arith.extui %9 : i1 to i32
    %c0_i32_9 = arith.constant 0 : i32
    %11 = arith.cmpi ne, %10, %c0_i32_9 : i32
    scf.if %11 {
      %c0_10 = arith.constant 0 : index
      %c0_11 = arith.constant 0 : index
      %12 = vector.load %arg6[%c0_10, %c0_11] : memref<128x128xf32, #tpu.memory_space<vmem>>, vector<128x128xf32>
      %c0_12 = arith.constant 0 : index
      %c0_13 = arith.constant 0 : index
      %13 = vector.load %arg5[%c0_12, %c0_13] : memref<1x128xf32, #tpu.memory_space<vmem>>, vector<1x128xf32>
      %14 = vector.broadcast %13 : vector<1x128xf32> to vector<128x128xf32>
      %15 = arith.addf %12, %14 : vector<128x128xf32>
      %c0_14 = arith.constant 0 : index
      %c0_15 = arith.constant 0 : index
      %16 = vector.load %arg6[%c0_14, %c0_15] : memref<128x128xf32, #tpu.memory_space<vmem>>, vector<128x128xf32>
      tpu.vector_store %arg6[%c0_14, %c0_15], %15 {strides = array<i32>} : memref<128x128xf32, #tpu.memory_space<vmem>>, vector<128x128xf32>,
    } else {
    }
    return
  }
  func.func @transform_0(%arg0: i32, %arg1: i32, %arg2: i32) -> (i32, i32) {
    %c0_i32 = arith.constant 0 : i32
    return %arg0, %arg2 : i32, i32
  }
  func.func @transform_1(%arg0: i32, %arg1: i32, %arg2: i32) -> (i32, i32) {
    %c0_i32 = arith.constant 0 : i32
    return %arg2, %arg1 : i32, i32
  }
  func.func @transform_2(%arg0: i32, %arg1: i32, %arg2: i32) -> (i32, i32) {
    %c0_i32 = arith.constant 0 : i32
    %c0_i32_0 = arith.constant 0 : i32
    return %c0_i32, %arg1 : i32, i32
  }
  func.func @transform_3(%arg0: i32, %arg1: i32, %arg2: i32) -> (i32, i32) {
    %c0_i32 = arith.constant 0 : i32
    return %arg0, %arg1 : i32, i32
  }
}

module attributes {stable_mosaic.version = 11 : i64} {
  func.func @_mm_kernel(%arg0: i32, %arg1: i32, %arg2: i32, %arg3: memref<128x128xbf16, #tpu.memory_space<vmem>>, %arg4: memref<128x128xbf16, #tpu.memory_space<vmem>>, %arg5: memref<1x128xf32, #tpu.memory_space<vmem>>, %arg6: memref<128x128xf32, #tpu.memory_space<vmem>>) attributes {dimension_semantics = [#tpu.dimension_semantics<parallel>, #tpu.dimension_semantics<parallel>, #tpu.dimension_semantics<arbitrary>], iteration_bounds = array<i64: 1, 1, 1>, scalar_prefetch = 0 : i64, scratch_operands = 0 : i64, tpu.core_type = #tpu.core_type<tc>, window_params = [{transform_indices = @transform_0, window_bounds = array<i64: 128, 128>}, {transform_indices = @transform_1, window_bounds = array<i64: 128, 128>}, {transform_indices = @transform_2, window_bounds = array<i64: 1, 128>}, {transform_indices = @transform_3, window_bounds = array<i64: 128, 128>}]} {
    %c0_i32 = arith.constant 0 : i32
    %0 = arith.cmpi eq, %arg2, %c0_i32 : i32
    %1 = arith.extui %0 : i1 to i32
    %c0_i32_0 = arith.constant 0 : i32
    %2 = arith.cmpi ne, %1, %c0_i32_0 : i32
    scf.if %2 {
      %cst_10 = arith.constant 0.000000e+00 : f32
      %12 = vector.broadcast %cst_10 : f32 to vector<128x128xf32>
      %c0_11 = arith.constant 0 : index
      %c0_12 = arith.constant 0 : index
      %13 = vector.load %arg6[%c0_11, %c0_12] : memref<128x128xf32, #tpu.memory_space<vmem>>, vector<128x128xf32>
      tpu.vector_store %arg6[%c0_11, %c0_12], %12 {strides = array<i32>} : memref<128x128xf32, #tpu.memory_space<vmem>>, vector<128x128xf32>,
    } else {
    }
    %c0 = arith.constant 0 : index
    %c0_1 = arith.constant 0 : index
    %3 = vector.load %arg6[%c0, %c0_1] : memref<128x128xf32, #tpu.memory_space<vmem>>, vector<128x128xf32>
    %c0_2 = arith.constant 0 : index
    %c0_3 = arith.constant 0 : index
    %4 = vector.load %arg3[%c0_2, %c0_3] : memref<128x128xbf16, #tpu.memory_space<vmem>>, vector<128x128xbf16>
    %c0_4 = arith.constant 0 : index
    %c0_5 = arith.constant 0 : index
    %5 = vector.load %arg4[%c0_4, %c0_5] : memref<128x128xbf16, #tpu.memory_space<vmem>>, vector<128x128xbf16>
    %cst = arith.constant dense<0.000000e+00> : vector<128x128xf32>
    %6 = tpu.matmul %4, %5, %cst {dimension_numbers = #tpu.dot_dimension_numbers<[1], [0], [0], [1], [0, 0, 1, 1], [], []>} : vector<128x128xbf16>, vector<128x128xbf16>, vector<128x128xf32> -> vector<128x128xf32>
    %7 = arith.addf %3, %6 : vector<128x128xf32>
    %c0_6 = arith.constant 0 : index
    %c0_7 = arith.constant 0 : index
    %8 = vector.load %arg6[%c0_6, %c0_7] : memref<128x128xf32, #tpu.memory_space<vmem>>, vector<128x128xf32>
    tpu.vector_store %arg6[%c0_6, %c0_7], %7 {strides = array<i32>} : memref<128x128xf32, #tpu.memory_space<vmem>>, vector<128x128xf32>,
    %c0_i32_8 = arith.constant 0 : i32
    %9 = arith.cmpi eq, %arg2, %c0_i32_8 : i32
    %10 = arith.extui %9 : i1 to i32
    %c0_i32_9 = arith.constant 0 : i32
    %11 = arith.cmpi ne, %10, %c0_i32_9 : i32
    scf.if %11 {
      %c0_10 = arith.constant 0 : index
      %c0_11 = arith.constant 0 : index
      %12 = vector.load %arg6[%c0_10, %c0_11] : memref<128x128xf32, #tpu.memory_space<vmem>>, vector<128x128xf32>
      %c0_12 = arith.constant 0 : index
      %c0_13 = arith.constant 0 : index
      %13 = vector.load %arg5[%c0_12, %c0_13] : memref<1x128xf32, #tpu.memory_space<vmem>>, vector<1x128xf32>
      %14 = vector.broadcast %13 : vector<1x128xf32> to vector<128x128xf32>
      %15 = arith.addf %12, %14 : vector<128x128xf32>
      %cst_14 = arith.constant 0.000000e+00 : f32
      %16 = vector.broadcast %cst_14 : f32 to vector<128x128xf32>
      %17 = arith.maximumf %15, %16 : vector<128x128xf32>
      %c0_15 = arith.constant 0 : index
      %c0_16 = arith.constant 0 : index
      %18 = vector.load %arg6[%c0_15, %c0_16] : memref<128x128xf32, #tpu.memory_space<vmem>>, vector<128x128xf32>
      tpu.vector_store %arg6[%c0_15, %c0_16], %17 {strides = array<i32>} : memref<128x128xf32, #tpu.memory_space<vmem>>, vector<128x128xf32>,
    } else {
    }
    return
  }
  func.func @transform_0(%arg0: i32, %arg1: i32, %arg2: i32) -> (i32, i32) {
    %c0_i32 = arith.constant 0 : i32
    return %arg0, %arg2 : i32, i32
  }
  func.func @transform_1(%arg0: i32, %arg1: i32, %arg2: i32) -> (i32, i32) {
    %c0_i32 = arith.constant 0 : i32
    return %arg2, %arg1 : i32, i32
  }
  func.func @transform_2(%arg0: i32, %arg1: i32, %arg2: i32) -> (i32, i32) {
    %c0_i32 = arith.constant 0 : i32
    %c0_i32_0 = arith.constant 0 : i32
    return %c0_i32, %arg1 : i32, i32
  }
  func.func @transform_3(%arg0: i32, %arg1: i32, %arg2: i32) -> (i32, i32) {
    %c0_i32 = arith.constant 0 : i32
    return %arg0, %arg1 : i32, i32
  }
}

module attributes {stable_mosaic.version = 11 : i64} {
  func.func @_mm_kernel(%arg0: i32, %arg1: i32, %arg2: i32, %arg3: memref<128x128xbf16, #tpu.memory_space<vmem>>, %arg4: memref<128x128xbf16, #tpu.memory_space<vmem>>, %arg5: memref<1x128xf32, #tpu.memory_space<vmem>>, %arg6: memref<128x128xf32, #tpu.memory_space<vmem>>, %arg7: memref<128x128xf32, #tpu.memory_space<vmem>>) attributes {dimension_semantics = [#tpu.dimension_semantics<parallel>, #tpu.dimension_semantics<parallel>, #tpu.dimension_semantics<arbitrary>], iteration_bounds = array<i64: 1, 1, 1>, scalar_prefetch = 0 : i64, scratch_operands = 0 : i64, tpu.core_type = #tpu.core_type<tc>, window_params = [{transform_indices = @transform_0, window_bounds = array<i64: 128, 128>}, {transform_indices = @transform_1, window_bounds = array<i64: 128, 128>}, {transform_indices = @transform_2, window_bounds = array<i64: 1, 128>}, {transform_indices = @transform_3, window_bounds = array<i64: 128, 128>}, {transform_indices = @transform_4, window_bounds = array<i64: 128, 128>}]} {
    %c0_i32 = arith.constant 0 : i32
    %0 = arith.cmpi eq, %arg2, %c0_i32 : i32
    %1 = arith.extui %0 : i1 to i32
    %c0_i32_0 = arith.constant 0 : i32
    %2 = arith.cmpi ne, %1, %c0_i32_0 : i32
    scf.if %2 {
      %cst_10 = arith.constant 0.000000e+00 : f32
      %12 = vector.broadcast %cst_10 : f32 to vector<128x128xf32>
      %c0_11 = arith.constant 0 : index
      %c0_12 = arith.constant 0 : index
      %13 = vector.load %arg7[%c0_11, %c0_12] : memref<128x128xf32, #tpu.memory_space<vmem>>, vector<128x128xf32>
      tpu.vector_store %arg7[%c0_11, %c0_12], %12 {strides = array<i32>} : memref<128x128xf32, #tpu.memory_space<vmem>>, vector<128x128xf32>,
    } else {
    }
    %c0 = arith.constant 0 : index
    %c0_1 = arith.constant 0 : index
    %3 = vector.load %arg7[%c0, %c0_1] : memref<128x128xf32, #tpu.memory_space<vmem>>, vector<128x128xf32>
    %c0_2 = arith.constant 0 : index
    %c0_3 = arith.constant 0 : index
    %4 = vector.load %arg3[%c0_2, %c0_3] : memref<128x128xbf16, #tpu.memory_space<vmem>>, vector<128x128xbf16>
    %c0_4 = arith.constant 0 : index
    %c0_5 = arith.constant 0 : index
    %5 = vector.load %arg4[%c0_4, %c0_5] : memref<128x128xbf16, #tpu.memory_space<vmem>>, vector<128x128xbf16>
    %cst = arith.constant dense<0.000000e+00> : vector<128x128xf32>
    %6 = tpu.matmul %4, %5, %cst {dimension_numbers = #tpu.dot_dimension_numbers<[1], [0], [0], [1], [0, 0, 1, 1], [], []>} : vector<128x128xbf16>, vector<128x128xbf16>, vector<128x128xf32> -> vector<128x128xf32>
    %7 = arith.addf %3, %6 : vector<128x128xf32>
    %c0_6 = arith.constant 0 : index
    %c0_7 = arith.constant 0 : index
    %8 = vector.load %arg7[%c0_6, %c0_7] : memref<128x128xf32, #tpu.memory_space<vmem>>, vector<128x128xf32>
    tpu.vector_store %arg7[%c0_6, %c0_7], %7 {strides = array<i32>} : memref<128x128xf32, #tpu.memory_space<vmem>>, vector<128x128xf32>,
    %c0_i32_8 = arith.constant 0 : i32
    %9 = arith.cmpi eq, %arg2, %c0_i32_8 : i32
    %10 = arith.extui %9 : i1 to i32
    %c0_i32_9 = arith.constant 0 : i32
    %11 = arith.cmpi ne, %10, %c0_i32_9 : i32
    scf.if %11 {
      %c0_10 = arith.constant 0 : index
      %c0_11 = arith.constant 0 : index
      %12 = vector.load %arg7[%c0_10, %c0_11] : memref<128x128xf32, #tpu.memory_space<vmem>>, vector<128x128xf32>
      %c0_12 = arith.constant 0 : index
      %c0_13 = arith.constant 0 : index
      %13 = vector.load %arg5[%c0_12, %c0_13] : memref<1x128xf32, #tpu.memory_space<vmem>>, vector<1x128xf32>
      %14 = vector.broadcast %13 : vector<1x128xf32> to vector<128x128xf32>
      %15 = arith.addf %12, %14 : vector<128x128xf32>
      %c0_14 = arith.constant 0 : index
      %c0_15 = arith.constant 0 : index
      %16 = vector.load %arg6[%c0_14, %c0_15] : memref<128x128xf32, #tpu.memory_space<vmem>>, vector<128x128xf32>
      %17 = arith.addf %15, %16 : vector<128x128xf32>
      %cst_16 = arith.constant 0.000000e+00 : f32
      %18 = vector.broadcast %cst_16 : f32 to vector<128x128xf32>
      %19 = arith.maximumf %17, %18 : vector<128x128xf32>
      %c0_17 = arith.constant 0 : index
      %c0_18 = arith.constant 0 : index
      %20 = vector.load %arg7[%c0_17, %c0_18] : memref<128x128xf32, #tpu.memory_space<vmem>>, vector<128x128xf32>
      tpu.vector_store %arg7[%c0_17, %c0_18], %19 {strides = array<i32>} : memref<128x128xf32, #tpu.memory_space<vmem>>, vector<128x128xf32>,
    } else {
    }
    return
  }
  func.func @transform_0(%arg0: i32, %arg1: i32, %arg2: i32) -> (i32, i32) {
    %c0_i32 = arith.constant 0 : i32
    return %arg0, %arg2 : i32, i32
  }
  func.func @transform_1(%arg0: i32, %arg1: i32, %arg2: i32) -> (i32, i32) {
    %c0_i32 = arith.constant 0 : i32
    return %arg2, %arg1 : i32, i32
  }
  func.func @transform_2(%arg0: i32, %arg1: i32, %arg2: i32) -> (i32, i32) {
    %c0_i32 = arith.constant 0 : i32
    %c0_i32_0 = arith.constant 0 : i32
    return %c0_i32, %arg1 : i32, i32
  }
  func.func @transform_3(%arg0: i32, %arg1: i32, %arg2: i32) -> (i32, i32) {
    %c0_i32 = arith.constant 0 : i32
    return %arg0, %arg1 : i32, i32
  }
  func.func @transform_4(%arg0: i32, %arg1: i32, %arg2: i32) -> (i32, i32) {
    %c0_i32 = arith.constant 0 : i32
    return %arg0, %arg1 : i32, i32
  }
}

</mosaic_0001>

<bundles_post_ra>
// kernel: basic_block_forward.3
= control target key start
LH: loop header
LB: loop body
LE: loop exit
PB: predicated region body
PF: predicated region fallthrough
CT: control target
= control target key end

     0   :  { %s587_s1 = inlined_call_operand.vmem [shape: bf16[128,128], index: 1, kind: input, shape index: {}]   ;;  %s588_s0 = inlined_call_operand.vmem [shape: bf16[128,128], index: 0, kind: input, shape index: {}]   ;;  %s589_s2 = inlined_call_operand.vmem [shape: f32[1,128], index: 2, kind: input, shape index: {}]   ;;  %s590_s3 = inlined_call_operand.vmem [shape: f32[128,128], index: 3, kind: output, shape index: {}]  }
   0x1   :  { %v452_v0 = vld [vmem:[%s587_s1] sm:$0xff]   ;;  %v453_v1 = vld [vmem:[%s587_s1 + $0x8] sm:$0xff]   ;;  %v454_v2 = vld [vmem:[%s587_s1 + $0x10] sm:$0xff]  }
   0x2   :  { %403 = vmatprep.subr.bf16.mxu0 %v452_v0  ;;  %435 = vmatprep.subr.bf16.mxu1 %v452_v0  ;;  %v455_v3 = vld [vmem:[%s587_s1 + $0x18] sm:$0xff]   ;;  %v460_v4 = vld [vmem:[%s588_s0] sm:$0xff]   ;;  %v457_v7 = vld [vmem:[%s587_s1 + $0x28] sm:$0xff]  }
   0x3   :  { %404 = vmatpush3.bf16.msra.mxu0 %v452_v0  ;;  %443 = vmatpush3.bf16.msra.mxu1 %v452_v0  ;;  %v461_v5 = vld [vmem:[%s588_s0 + $0x20] sm:$0xff]   ;;  %v458_v8 = vld [vmem:[%s587_s1 + $0x30] sm:$0xff]   ;;  %v459_v9 = vld [vmem:[%s587_s1 + $0x38] sm:$0xff]  }
   0x4   :  { %405 = vmatprep.subr.bf16.mxu0 %v453_v1  ;;  %436 = vmatprep.subr.bf16.mxu1 %v453_v1  ;;  %v456_v6 = vld [vmem:[%s587_s1 + $0x20] sm:$0xff]   ;;  %v462_v10 = vld [vmem:[%s588_s0 + $0x8] sm:$0xff]   ;;  %v464_v12 = vld [vmem:[%s588_s0 + $0x10] sm:$0xff]  }
   0x5   :  { %419 = vmatprep.mubr.bf16.mxu0 %v460_v4  ;;  %427 = vmatprep.mubr.bf16.mxu1 %v461_v5  ;;  %v463_v11 = vld [vmem:[%s588_s0 + $0x28] sm:$0xff]   ;;  %v465_v13 = vld [vmem:[%s588_s0 + $0x30] sm:$0xff]   ;;  %v466_v14 = vld [vmem:[%s588_s0 + $0x18] sm:$0xff]  }
   0x6   :  { %v467_v15 = vld [vmem:[%s588_s0 + $0x38] sm:$0xff]   ;;  %v386_v17 = vld [vmem:[%s589_s2] ss:$0 sm:$0xff] }
   0x7   :  { %406 = vmatpush3.bf16.msra.mxu0 %v453_v1  ;;  %444 = vmatpush3.bf16.msra.mxu1 %v453_v1 }
   0x8   :  { %407 = vmatprep.subr.bf16.mxu0 %v454_v2  ;;  %437 = vmatprep.subr.bf16.mxu1 %v454_v2 }
   0xb   :  { %408 = vmatpush3.bf16.msra.mxu0 %v454_v2  ;;  %445 = vmatpush3.bf16.msra.mxu1 %v454_v2 }
   0xc   :  { %409 = vmatprep.subr.bf16.mxu0 %v455_v3  ;;  %438 = vmatprep.subr.bf16.mxu1 %v455_v3 }
   0xf   :  { %410 = vmatpush3.bf16.msra.mxu0 %v455_v3  ;;  %446 = vmatpush3.bf16.msra.mxu1 %v455_v3 }
  0x10   :  { %411 = vmatprep.subr.bf16.mxu0 %v456_v6  ;;  %439 = vmatprep.subr.bf16.mxu1 %v456_v6 }
  0x13   :  { %412 = vmatpush3.bf16.msra.mxu0 %v456_v6  ;;  %447 = vmatpush3.bf16.msra.mxu1 %v456_v6 }
  0x14   :  { %413 = vmatprep.subr.bf16.mxu0 %v457_v7  ;;  %440 = vmatprep.subr.bf16.mxu1 %v457_v7 }
  0x17   :  { %414 = vmatpush3.bf16.msra.mxu0 %v457_v7  ;;  %448 = vmatpush3.bf16.msra.mxu1 %v457_v7 }
  0x18   :  { %415 = vmatprep.subr.bf16.mxu0 %v458_v8  ;;  %441 = vmatprep.subr.bf16.mxu1 %v458_v8 }
  0x1b   :  { %416 = vmatpush3.bf16.msra.mxu0 %v458_v8  ;;  %449 = vmatpush3.bf16.msra.mxu1 %v458_v8 }
  0x1c   :  { %417 = vmatprep.subr.bf16.mxu0 %v459_v9  ;;  %442 = vmatprep.subr.bf16.mxu1 %v459_v9 }
  0x1f   :  { %418 = vmatpush3.bf16.msra.mxu0 %v459_v9  ;;  %450 = vmatpush3.bf16.msra.mxu1 %v459_v9 }
  0x22   :  { %420 = vmatmul.mubr.bf16.vlgmr.msra.gmra.mrb[0].mxu0 %v462_v10  ;;  %428 = vmatmul.mubr.bf16.vlgmr.msra.gmra.mrb[0].mxu1 %v463_v11 }
  0x23   :  { %423 = vmatprep.mubr.bf16.mxu0 %v464_v12  ;;  %431 = vmatprep.mubr.bf16.mxu1 %v465_v13 }
  0x2a   :  { %424 = vmatmul.mubr.bf16.gmra.mrb[4].mxu0 %v466_v14  ;;  %432 = vmatmul.mubr.bf16.gmra.mrb[4].mxu1 %v467_v15 }
  0xf5   :  { %v421_v16 = vpop.f32.mrb[0].mxu0  ;;  %v429_v18 = vpop.f32.mrb[0].mxu1 }
  0xf6   :  { %v213_v19 = vpop.f32.mrb[1].mxu0  ;;  %v245_v20 = vpop.f32.mrb[1].mxu1  ;;  %v336_v23 = vadd.f32 %v421_v16, %v386_v17  ;;  %v344_v24 = vadd.f32 %v429_v18, %v386_v17 }
  0xf7   :  { %v422_v21 = vpop.f32.mrb[2].mxu0  ;;  %v430_v22 = vpop.f32.mrb[2].mxu1  ;;  %v334_v27 = vadd.f32 %v386_v17, %v213_v19  ;;  %v342_v28 = vadd.f32 %v386_v17, %v245_v20 }
  0xf8   :  { %v216_v25 = vpop.f32.mrb[3].mxu0  ;;  %v248_v26 = vpop.f32.mrb[3].mxu1  ;;  %352 = vst [vmem:[%s590_s3 + $0x10] sm:$0xff] %v336_v23  ;;  %360 = vst [vmem:[%s590_s3 + $0x50] sm:$0xff] %v344_v24  ;;  %v337_v29 = vadd.f32 %v422_v21, %v386_v17  ;;  %v345_v30 = vadd.f32 %v430_v22, %v386_v17 }
  0xf9   :  { %350 = vst [vmem:[%s590_s3] sm:$0xff] %v334_v27  ;;  %358 = vst [vmem:[%s590_s3 + $0x40] sm:$0xff] %v342_v28  ;;  %v335_v31 = vadd.f32 %v386_v17, %v216_v25  ;;  %v343_v32 = vadd.f32 %v386_v17, %v248_v26 }
  0xfa   :  { %353 = vst [vmem:[%s590_s3 + $0x18] sm:$0xff] %v337_v29  ;;  %361 = vst [vmem:[%s590_s3 + $0x58] sm:$0xff] %v345_v30 }
  0xfb   :  { %351 = vst [vmem:[%s590_s3 + $0x8] sm:$0xff] %v335_v31  ;;  %359 = vst [vmem:[%s590_s3 + $0x48] sm:$0xff] %v343_v32 }
  0xfd   :  { %v425_v33 = vpop.f32.mrb[4].mxu0  ;;  %v433_v34 = vpop.f32.mrb[4].mxu1 }
  0xfe   :  { %v229_v35 = vpop.f32.mrb[5].mxu0  ;;  %v261_v36 = vpop.f32.mrb[5].mxu1  ;;  %v340_v39 = vadd.f32 %v425_v33, %v386_v17  ;;  %v348_v40 = vadd.f32 %v433_v34, %v386_v17 }
  0xff   :  { %v426_v37 = vpop.f32.mrb[6].mxu0  ;;  %v434_v38 = vpop.f32.mrb[6].mxu1  ;;  %v338_v43 = vadd.f32 %v386_v17, %v229_v35  ;;  %v346_v44 = vadd.f32 %v386_v17, %v261_v36 }
 0x100   :  { %v232_v41 = vpop.f32.mrb[7].mxu0  ;;  %v264_v42 = vpop.f32.mrb[7].mxu1  ;;  %356 = vst [vmem:[%s590_s3 + $0x30] sm:$0xff] %v340_v39  ;;  %364 = vst [vmem:[%s590_s3 + $0x70] sm:$0xff] %v348_v40  ;;  %v341_v45 = vadd.f32 %v426_v37, %v386_v17  ;;  %v349_v46 = vadd.f32 %v434_v38, %v386_v17 }
 0x101   :  { %354 = vst [vmem:[%s590_s3 + $0x20] sm:$0xff] %v338_v43  ;;  %362 = vst [vmem:[%s590_s3 + $0x60] sm:$0xff] %v346_v44  ;;  %v339_v47 = vadd.f32 %v386_v17, %v232_v41  ;;  %v347_v48 = vadd.f32 %v386_v17, %v264_v42 }
 0x102   :  { %357 = vst [vmem:[%s590_s3 + $0x38] sm:$0xff] %v341_v45  ;;  %365 = vst [vmem:[%s590_s3 + $0x78] sm:$0xff] %v349_v46 }
 0x103   :  { %355 = vst [vmem:[%s590_s3 + $0x28] sm:$0xff] %v339_v47  ;;  %363 = vst [vmem:[%s590_s3 + $0x68] sm:$0xff] %v347_v48 }

// kernel: basic_block_forward.4
= control target key start
LH: loop header
LB: loop body
LE: loop exit
PB: predicated region body
PF: predicated region fallthrough
CT: control target
= control target key end

     0   :  { %s603_s1 = inlined_call_operand.vmem [shape: bf16[128,128], index: 1, kind: input, shape index: {}]   ;;  %s604_s0 = inlined_call_operand.vmem [shape: bf16[128,128], index: 0, kind: input, shape index: {}]   ;;  %s605_s2 = inlined_call_operand.vmem [shape: f32[1,128], index: 2, kind: input, shape index: {}]   ;;  %s606_s3 = inlined_call_operand.vmem [shape: f32[128,128], index: 3, kind: output, shape index: {}]  }
   0x1   :  { %v468_v0 = vld [vmem:[%s603_s1] sm:$0xff]   ;;  %v469_v1 = vld [vmem:[%s603_s1 + $0x8] sm:$0xff]   ;;  %v470_v2 = vld [vmem:[%s603_s1 + $0x10] sm:$0xff]  }
   0x2   :  { %419 = vmatprep.subr.bf16.mxu0 %v468_v0  ;;  %451 = vmatprep.subr.bf16.mxu1 %v468_v0  ;;  %v471_v3 = vld [vmem:[%s603_s1 + $0x18] sm:$0xff]   ;;  %v476_v4 = vld [vmem:[%s604_s0] sm:$0xff]   ;;  %v473_v7 = vld [vmem:[%s603_s1 + $0x28] sm:$0xff]  }
   0x3   :  { %420 = vmatpush3.bf16.msra.mxu0 %v468_v0  ;;  %459 = vmatpush3.bf16.msra.mxu1 %v468_v0  ;;  %v477_v5 = vld [vmem:[%s604_s0 + $0x20] sm:$0xff]   ;;  %v474_v8 = vld [vmem:[%s603_s1 + $0x30] sm:$0xff]   ;;  %v475_v9 = vld [vmem:[%s603_s1 + $0x38] sm:$0xff]  }
   0x4   :  { %421 = vmatprep.subr.bf16.mxu0 %v469_v1  ;;  %452 = vmatprep.subr.bf16.mxu1 %v469_v1  ;;  %v472_v6 = vld [vmem:[%s603_s1 + $0x20] sm:$0xff]   ;;  %v478_v10 = vld [vmem:[%s604_s0 + $0x8] sm:$0xff]   ;;  %v480_v12 = vld [vmem:[%s604_s0 + $0x10] sm:$0xff]  }
   0x5   :  { %435 = vmatprep.mubr.bf16.mxu0 %v476_v4  ;;  %443 = vmatprep.mubr.bf16.mxu1 %v477_v5  ;;  %v479_v11 = vld [vmem:[%s604_s0 + $0x28] sm:$0xff]   ;;  %v481_v13 = vld [vmem:[%s604_s0 + $0x30] sm:$0xff]   ;;  %v482_v14 = vld [vmem:[%s604_s0 + $0x18] sm:$0xff]  }
   0x6   :  { %v483_v15 = vld [vmem:[%s604_s0 + $0x38] sm:$0xff]   ;;  %v402_v17 = vld [vmem:[%s605_s2] ss:$0 sm:$0xff] }
   0x7   :  { %422 = vmatpush3.bf16.msra.mxu0 %v469_v1  ;;  %460 = vmatpush3.bf16.msra.mxu1 %v469_v1 }
   0x8   :  { %423 = vmatprep.subr.bf16.mxu0 %v470_v2  ;;  %453 = vmatprep.subr.bf16.mxu1 %v470_v2 }
   0xb   :  { %424 = vmatpush3.bf16.msra.mxu0 %v470_v2  ;;  %461 = vmatpush3.bf16.msra.mxu1 %v470_v2 }
   0xc   :  { %425 = vmatprep.subr.bf16.mxu0 %v471_v3  ;;  %454 = vmatprep.subr.bf16.mxu1 %v471_v3 }
   0xf   :  { %426 = vmatpush3.bf16.msra.mxu0 %v471_v3  ;;  %462 = vmatpush3.bf16.msra.mxu1 %v471_v3 }
  0x10   :  { %427 = vmatprep.subr.bf16.mxu0 %v472_v6  ;;  %455 = vmatprep.subr.bf16.mxu1 %v472_v6 }
  0x13   :  { %428 = vmatpush3.bf16.msra.mxu0 %v472_v6  ;;  %463 = vmatpush3.bf16.msra.mxu1 %v472_v6 }
  0x14   :  { %429 = vmatprep.subr.bf16.mxu0 %v473_v7  ;;  %456 = vmatprep.subr.bf16.mxu1 %v473_v7 }
  0x17   :  { %430 = vmatpush3.bf16.msra.mxu0 %v473_v7  ;;  %464 = vmatpush3.bf16.msra.mxu1 %v473_v7 }
  0x18   :  { %431 = vmatprep.subr.bf16.mxu0 %v474_v8  ;;  %457 = vmatprep.subr.bf16.mxu1 %v474_v8 }
  0x1b   :  { %432 = vmatpush3.bf16.msra.mxu0 %v474_v8  ;;  %465 = vmatpush3.bf16.msra.mxu1 %v474_v8 }
  0x1c   :  { %433 = vmatprep.subr.bf16.mxu0 %v475_v9  ;;  %458 = vmatprep.subr.bf16.mxu1 %v475_v9 }
  0x1f   :  { %434 = vmatpush3.bf16.msra.mxu0 %v475_v9  ;;  %466 = vmatpush3.bf16.msra.mxu1 %v475_v9 }
  0x22   :  { %436 = vmatmul.mubr.bf16.vlgmr.msra.gmra.mrb[0].mxu0 %v478_v10  ;;  %444 = vmatmul.mubr.bf16.vlgmr.msra.gmra.mrb[0].mxu1 %v479_v11 }
  0x23   :  { %439 = vmatprep.mubr.bf16.mxu0 %v480_v12  ;;  %447 = vmatprep.mubr.bf16.mxu1 %v481_v13 }
  0x2a   :  { %440 = vmatmul.mubr.bf16.gmra.mrb[4].mxu0 %v482_v14  ;;  %448 = vmatmul.mubr.bf16.gmra.mrb[4].mxu1 %v483_v15 }
  0xf5   :  { %v437_v16 = vpop.f32.mrb[0].mxu0  ;;  %v445_v18 = vpop.f32.mrb[0].mxu1 }
  0xf6   :  { %v213_v19 = vpop.f32.mrb[1].mxu0  ;;  %v245_v20 = vpop.f32.mrb[1].mxu1  ;;  %v336_v23 = vadd.f32 %v437_v16, %v402_v17  ;;  %v344_v24 = vadd.f32 %v445_v18, %v402_v17 }
  0xf7   :  { %v438_v21 = vpop.f32.mrb[2].mxu0  ;;  %v446_v22 = vpop.f32.mrb[2].mxu1  ;;  %v334_v27 = vadd.f32 %v402_v17, %v213_v19  ;;  %v342_v28 = vadd.f32 %v402_v17, %v245_v20 }
  0xf8   :  { %v216_v25 = vpop.f32.mrb[3].mxu0  ;;  %v248_v26 = vpop.f32.mrb[3].mxu1  ;;  %v352_v29 = vmax.f32 %v336_v23, 0.0  ;;  %v360_v30 = vmax.f32 %v344_v24, 0.0  ;;  %v337_v31 = vadd.f32 %v438_v21, %v402_v17  ;;  %v345_v32 = vadd.f32 %v446_v22, %v402_v17 }
  0xf9   :  { %v350_v33 = vmax.f32 %v334_v27, 0.0  ;;  %v358_v34 = vmax.f32 %v342_v28, 0.0  ;;  %v335_v35 = vadd.f32 %v402_v17, %v216_v25  ;;  %v343_v36 = vadd.f32 %v402_v17, %v248_v26 }
  0xfa   :  { %368 = vst [vmem:[%s606_s3 + $0x10] sm:$0xff] %v352_v29  ;;  %376 = vst [vmem:[%s606_s3 + $0x50] sm:$0xff] %v360_v30  ;;  %v353_v37 = vmax.f32 %v337_v31, 0.0  ;;  %v361_v38 = vmax.f32 %v345_v32, 0.0 }
  0xfb   :  { %366 = vst [vmem:[%s606_s3] sm:$0xff] %v350_v33  ;;  %374 = vst [vmem:[%s606_s3 + $0x40] sm:$0xff] %v358_v34  ;;  %v351_v39 = vmax.f32 %v335_v35, 0.0  ;;  %v359_v40 = vmax.f32 %v343_v36, 0.0 }
  0xfc   :  { %369 = vst [vmem:[%s606_s3 + $0x18] sm:$0xff] %v353_v37  ;;  %377 = vst [vmem:[%s606_s3 + $0x58] sm:$0xff] %v361_v38 }
  0xfd   :  { %v441_v41 = vpop.f32.mrb[4].mxu0  ;;  %v449_v42 = vpop.f32.mrb[4].mxu1  ;;  %367 = vst [vmem:[%s606_s3 + $0x8] sm:$0xff] %v351_v39  ;;  %375 = vst [vmem:[%s606_s3 + $0x48] sm:$0xff] %v359_v40 }
  0xfe   :  { %v229_v43 = vpop.f32.mrb[5].mxu0  ;;  %v261_v44 = vpop.f32.mrb[5].mxu1  ;;  %v340_v47 = vadd.f32 %v441_v41, %v402_v17  ;;  %v348_v48 = vadd.f32 %v449_v42, %v402_v17 }
  0xff   :  { %v442_v45 = vpop.f32.mrb[6].mxu0  ;;  %v450_v46 = vpop.f32.mrb[6].mxu1  ;;  %v338_v51 = vadd.f32 %v402_v17, %v229_v43  ;;  %v346_v52 = vadd.f32 %v402_v17, %v261_v44 }
 0x100   :  { %v232_v49 = vpop.f32.mrb[7].mxu0  ;;  %v264_v50 = vpop.f32.mrb[7].mxu1  ;;  %v356_v53 = vmax.f32 %v340_v47, 0.0  ;;  %v364_v54 = vmax.f32 %v348_v48, 0.0  ;;  %v341_v55 = vadd.f32 %v442_v45, %v402_v17  ;;  %v349_v56 = vadd.f32 %v450_v46, %v402_v17 }
 0x101   :  { %v354_v57 = vmax.f32 %v338_v51, 0.0  ;;  %v362_v58 = vmax.f32 %v346_v52, 0.0  ;;  %v339_v59 = vadd.f32 %v402_v17, %v232_v49  ;;  %v347_v60 = vadd.f32 %v402_v17, %v264_v50 }
 0x102   :  { %372 = vst [vmem:[%s606_s3 + $0x30] sm:$0xff] %v356_v53  ;;  %380 = vst [vmem:[%s606_s3 + $0x70] sm:$0xff] %v364_v54  ;;  %v357_v61 = vmax.f32 %v341_v55, 0.0  ;;  %v365_v62 = vmax.f32 %v349_v56, 0.0 }
 0x103   :  { %370 = vst [vmem:[%s606_s3 + $0x20] sm:$0xff] %v354_v57  ;;  %378 = vst [vmem:[%s606_s3 + $0x60] sm:$0xff] %v362_v58  ;;  %v355_v63 = vmax.f32 %v339_v59, 0.0  ;;  %v363_v0 = vmax.f32 %v347_v60, 0.0 }
 0x104   :  { %373 = vst [vmem:[%s606_s3 + $0x38] sm:$0xff] %v357_v61  ;;  %381 = vst [vmem:[%s606_s3 + $0x78] sm:$0xff] %v365_v62 }
 0x105   :  { %371 = vst [vmem:[%s606_s3 + $0x28] sm:$0xff] %v355_v63  ;;  %379 = vst [vmem:[%s606_s3 + $0x68] sm:$0xff] %v363_v0 }

// kernel: basic_block_forward.5
= control target key start
LH: loop header
LB: loop body
LE: loop exit
PB: predicated region body
PF: predicated region fallthrough
CT: control target
= control target key end

     0   :  { %s709_s1 = inlined_call_operand.vmem [shape: bf16[128,128], index: 1, kind: input, shape index: {}]   ;;  %s710_s0 = inlined_call_operand.vmem [shape: bf16[128,128], index: 0, kind: input, shape index: {}]   ;;  %s711_s2 = inlined_call_operand.vmem [shape: f32[1,128], index: 2, kind: input, shape index: {}]   ;;  %s712_s3 = inlined_call_operand.vmem [shape: f32[128,128], index: 3, kind: input, shape index: {}]   ;;  %s713_s4 = inlined_call_operand.vmem [shape: f32[128,128], index: 4, kind: output, shape index: {}]  }
   0x1   :  { %v503_v0 = vld [vmem:[%s709_s1] sm:$0xff]   ;;  %v504_v1 = vld [vmem:[%s709_s1 + $0x8] sm:$0xff]   ;;  %v505_v2 = vld [vmem:[%s709_s1 + $0x10] sm:$0xff]  }
   0x2   :  { %454 = vmatprep.subr.bf16.mxu0 %v503_v0  ;;  %486 = vmatprep.subr.bf16.mxu1 %v503_v0  ;;  %v506_v3 = vld [vmem:[%s709_s1 + $0x18] sm:$0xff]   ;;  %v511_v4 = vld [vmem:[%s710_s0] sm:$0xff]   ;;  %v508_v7 = vld [vmem:[%s709_s1 + $0x28] sm:$0xff]  }
   0x3   :  { %455 = vmatpush3.bf16.msra.mxu0 %v503_v0  ;;  %494 = vmatpush3.bf16.msra.mxu1 %v503_v0  ;;  %v512_v5 = vld [vmem:[%s710_s0 + $0x20] sm:$0xff]   ;;  %v509_v8 = vld [vmem:[%s709_s1 + $0x30] sm:$0xff]   ;;  %v510_v9 = vld [vmem:[%s709_s1 + $0x38] sm:$0xff]  }
   0x4   :  { %456 = vmatprep.subr.bf16.mxu0 %v504_v1  ;;  %487 = vmatprep.subr.bf16.mxu1 %v504_v1  ;;  %v507_v6 = vld [vmem:[%s709_s1 + $0x20] sm:$0xff]   ;;  %v513_v10 = vld [vmem:[%s710_s0 + $0x8] sm:$0xff]   ;;  %v515_v12 = vld [vmem:[%s710_s0 + $0x10] sm:$0xff]  }
   0x5   :  { %470 = vmatprep.mubr.bf16.mxu0 %v511_v4  ;;  %478 = vmatprep.mubr.bf16.mxu1 %v512_v5  ;;  %v514_v11 = vld [vmem:[%s710_s0 + $0x28] sm:$0xff]   ;;  %v516_v13 = vld [vmem:[%s710_s0 + $0x30] sm:$0xff]   ;;  %v517_v14 = vld [vmem:[%s710_s0 + $0x18] sm:$0xff]  }
   0x6   :  { %v518_v15 = vld [vmem:[%s710_s0 + $0x38] sm:$0xff]   ;;  %v595_v17 = vld [vmem:[%s711_s2] ss:$0 sm:$0xff]  ;;  %v355_v21 = vld [vmem:[%s712_s3 + $0x10] sm:$0xff] }
   0x7   :  { %457 = vmatpush3.bf16.msra.mxu0 %v504_v1  ;;  %495 = vmatpush3.bf16.msra.mxu1 %v504_v1  ;;  %v363_v22 = vld [vmem:[%s712_s3 + $0x50] sm:$0xff]  ;;  %v353_v27 = vld [vmem:[%s712_s3] sm:$0xff]  ;;  %v356_v33 = vld [vmem:[%s712_s3 + $0x18] sm:$0xff] }
   0x8   :  { %458 = vmatprep.subr.bf16.mxu0 %v505_v2  ;;  %488 = vmatprep.subr.bf16.mxu1 %v505_v2  ;;  %v361_v28 = vld [vmem:[%s712_s3 + $0x40] sm:$0xff]  ;;  %v364_v34 = vld [vmem:[%s712_s3 + $0x58] sm:$0xff]  ;;  %v354_v39 = vld [vmem:[%s712_s3 + $0x8] sm:$0xff] }
   0x9   :  { %v362_v40 = vld [vmem:[%s712_s3 + $0x48] sm:$0xff]  ;;  %v359_v61 = vld [vmem:[%s712_s3 + $0x30] sm:$0xff]  ;;  %v365_v4 = vld [vmem:[%s712_s3 + $0x60] sm:$0xff] }
   0xa   :  { %v367_v62 = vld [vmem:[%s712_s3 + $0x70] sm:$0xff] }
   0xb   :  { %459 = vmatpush3.bf16.msra.mxu0 %v505_v2  ;;  %496 = vmatpush3.bf16.msra.mxu1 %v505_v2 }
   0xc   :  { %460 = vmatprep.subr.bf16.mxu0 %v506_v3  ;;  %489 = vmatprep.subr.bf16.mxu1 %v506_v3 }
   0xf   :  { %461 = vmatpush3.bf16.msra.mxu0 %v506_v3  ;;  %497 = vmatpush3.bf16.msra.mxu1 %v506_v3  ;;  %v357_v3 = vld [vmem:[%s712_s3 + $0x20] sm:$0xff] }
  0x10   :  { %462 = vmatprep.subr.bf16.mxu0 %v507_v6  ;;  %490 = vmatprep.subr.bf16.mxu1 %v507_v6 }
  0x13   :  { %463 = vmatpush3.bf16.msra.mxu0 %v507_v6  ;;  %498 = vmatpush3.bf16.msra.mxu1 %v507_v6 }
  0x14   :  { %464 = vmatprep.subr.bf16.mxu0 %v508_v7  ;;  %491 = vmatprep.subr.bf16.mxu1 %v508_v7 }
  0x17   :  { %465 = vmatpush3.bf16.msra.mxu0 %v508_v7  ;;  %499 = vmatpush3.bf16.msra.mxu1 %v508_v7 }
  0x18   :  { %466 = vmatprep.subr.bf16.mxu0 %v509_v8  ;;  %492 = vmatprep.subr.bf16.mxu1 %v509_v8 }
  0x1b   :  { %467 = vmatpush3.bf16.msra.mxu0 %v509_v8  ;;  %500 = vmatpush3.bf16.msra.mxu1 %v509_v8 }
  0x1c   :  { %468 = vmatprep.subr.bf16.mxu0 %v510_v9  ;;  %493 = vmatprep.subr.bf16.mxu1 %v510_v9 }
  0x1f   :  { %469 = vmatpush3.bf16.msra.mxu0 %v510_v9  ;;  %501 = vmatpush3.bf16.msra.mxu1 %v510_v9  ;;  %v360_v9 = vld [vmem:[%s712_s3 + $0x38] sm:$0xff] }
  0x22   :  { %471 = vmatmul.mubr.bf16.vlgmr.msra.gmra.mrb[0].mxu0 %v513_v10  ;;  %479 = vmatmul.mubr.bf16.vlgmr.msra.gmra.mrb[0].mxu1 %v514_v11  ;;  %v368_v10 = vld [vmem:[%s712_s3 + $0x78] sm:$0xff] }
  0x23   :  { %474 = vmatprep.mubr.bf16.mxu0 %v515_v12  ;;  %482 = vmatprep.mubr.bf16.mxu1 %v516_v13 }
  0x2a   :  { %475 = vmatmul.mubr.bf16.gmra.mrb[4].mxu0 %v517_v14  ;;  %483 = vmatmul.mubr.bf16.gmra.mrb[4].mxu1 %v518_v15  ;;  %v358_v15 = vld [vmem:[%s712_s3 + $0x28] sm:$0xff] }
  0xf5   :  { %v472_v16 = vpop.f32.mrb[0].mxu0  ;;  %v480_v18 = vpop.f32.mrb[0].mxu1 }
  0xf6   :  { %v216_v19 = vpop.f32.mrb[1].mxu0  ;;  %v248_v20 = vpop.f32.mrb[1].mxu1  ;;  %v339_v25 = vadd.f32 %v472_v16, %v595_v17  ;;  %v347_v26 = vadd.f32 %v480_v18, %v595_v17  ;;  %v366_v16 = vld [vmem:[%s712_s3 + $0x68] sm:$0xff] }
  0xf7   :  { %v473_v23 = vpop.f32.mrb[2].mxu0  ;;  %v481_v24 = vpop.f32.mrb[2].mxu1  ;;  %v337_v31 = vadd.f32 %v595_v17, %v216_v19  ;;  %v345_v32 = vadd.f32 %v595_v17, %v248_v20 }
  0xf8   :  { %v219_v29 = vpop.f32.mrb[3].mxu0  ;;  %v251_v30 = vpop.f32.mrb[3].mxu1  ;;  %v371_v35 = vadd.f32 %v355_v21, %v339_v25  ;;  %v379_v36 = vadd.f32 %v363_v22, %v347_v26  ;;  %v340_v37 = vadd.f32 %v473_v23, %v595_v17  ;;  %v348_v38 = vadd.f32 %v481_v24, %v595_v17 }
  0xf9   :  { %v369_v41 = vadd.f32 %v353_v27, %v337_v31  ;;  %v377_v42 = vadd.f32 %v361_v28, %v345_v32  ;;  %v338_v43 = vadd.f32 %v595_v17, %v219_v29  ;;  %v346_v44 = vadd.f32 %v595_v17, %v251_v30 }
  0xfa   :  { %v387_v45 = vmax.f32 %v371_v35, 0.0  ;;  %v395_v46 = vmax.f32 %v379_v36, 0.0  ;;  %v372_v47 = vadd.f32 %v356_v33, %v340_v37  ;;  %v380_v48 = vadd.f32 %v364_v34, %v348_v38 }
  0xfb   :  { %v385_v49 = vmax.f32 %v369_v41, 0.0  ;;  %v393_v50 = vmax.f32 %v377_v42, 0.0  ;;  %v370_v51 = vadd.f32 %v354_v39, %v338_v43  ;;  %v378_v52 = vadd.f32 %v362_v40, %v346_v44 }
  0xfc   :  { %403 = vst [vmem:[%s713_s4 + $0x10] sm:$0xff] %v387_v45  ;;  %411 = vst [vmem:[%s713_s4 + $0x50] sm:$0xff] %v395_v46  ;;  %v388_v55 = vmax.f32 %v372_v47, 0.0  ;;  %v396_v56 = vmax.f32 %v380_v48, 0.0 }
  0xfd   :  { %v476_v53 = vpop.f32.mrb[4].mxu0  ;;  %v484_v54 = vpop.f32.mrb[4].mxu1  ;;  %401 = vst [vmem:[%s713_s4] sm:$0xff] %v385_v49  ;;  %409 = vst [vmem:[%s713_s4 + $0x40] sm:$0xff] %v393_v50  ;;  %v386_v59 = vmax.f32 %v370_v51, 0.0  ;;  %v394_v60 = vmax.f32 %v378_v52, 0.0 }
  0xfe   :  { %v232_v57 = vpop.f32.mrb[5].mxu0  ;;  %v264_v58 = vpop.f32.mrb[5].mxu1  ;;  %404 = vst [vmem:[%s713_s4 + $0x18] sm:$0xff] %v388_v55  ;;  %412 = vst [vmem:[%s713_s4 + $0x58] sm:$0xff] %v396_v56  ;;  %v343_v1 = vadd.f32 %v476_v53, %v595_v17  ;;  %v351_v2 = vadd.f32 %v484_v54, %v595_v17 }
  0xff   :  { %v477_v63 = vpop.f32.mrb[6].mxu0  ;;  %v485_v0 = vpop.f32.mrb[6].mxu1  ;;  %402 = vst [vmem:[%s713_s4 + $0x8] sm:$0xff] %v386_v59  ;;  %410 = vst [vmem:[%s713_s4 + $0x48] sm:$0xff] %v394_v60  ;;  %v341_v7 = vadd.f32 %v595_v17, %v232_v57  ;;  %v349_v8 = vadd.f32 %v595_v17, %v264_v58 }
 0x100   :  { %v235_v5 = vpop.f32.mrb[7].mxu0  ;;  %v267_v6 = vpop.f32.mrb[7].mxu1  ;;  %v375_v11 = vadd.f32 %v359_v61, %v343_v1  ;;  %v383_v12 = vadd.f32 %v367_v62, %v351_v2  ;;  %v344_v13 = vadd.f32 %v477_v63, %v595_v17  ;;  %v352_v14 = vadd.f32 %v485_v0, %v595_v17 }
 0x101   :  { %v373_v18 = vadd.f32 %v357_v3, %v341_v7  ;;  %v381_v19 = vadd.f32 %v365_v4, %v349_v8  ;;  %v342_v20 = vadd.f32 %v595_v17, %v235_v5  ;;  %v350_v21 = vadd.f32 %v595_v17, %v267_v6 }
 0x102   :  { %v391_v22 = vmax.f32 %v375_v11, 0.0  ;;  %v399_v23 = vmax.f32 %v383_v12, 0.0  ;;  %v376_v24 = vadd.f32 %v360_v9, %v344_v13  ;;  %v384_v25 = vadd.f32 %v368_v10, %v352_v14 }
 0x103   :  { %v389_v26 = vmax.f32 %v373_v18, 0.0  ;;  %v397_v27 = vmax.f32 %v381_v19, 0.0  ;;  %v374_v28 = vadd.f32 %v358_v15, %v342_v20  ;;  %v382_v29 = vadd.f32 %v366_v16, %v350_v21 }
 0x104   :  { %407 = vst [vmem:[%s713_s4 + $0x30] sm:$0xff] %v391_v22  ;;  %415 = vst [vmem:[%s713_s4 + $0x70] sm:$0xff] %v399_v23  ;;  %v392_v30 = vmax.f32 %v376_v24, 0.0  ;;  %v400_v31 = vmax.f32 %v384_v25, 0.0 }
 0x105   :  { %405 = vst [vmem:[%s713_s4 + $0x20] sm:$0xff] %v389_v26  ;;  %413 = vst [vmem:[%s713_s4 + $0x60] sm:$0xff] %v397_v27  ;;  %v390_v17 = vmax.f32 %v374_v28, 0.0  ;;  %v398_v32 = vmax.f32 %v382_v29, 0.0 }
 0x106   :  { %408 = vst [vmem:[%s713_s4 + $0x38] sm:$0xff] %v392_v30  ;;  %416 = vst [vmem:[%s713_s4 + $0x78] sm:$0xff] %v400_v31 }
 0x107   :  { %406 = vst [vmem:[%s713_s4 + $0x28] sm:$0xff] %v390_v17  ;;  %414 = vst [vmem:[%s713_s4 + $0x68] sm:$0xff] %v398_v32 }

</bundles_post_ra>
